<compile_context>
chip_gen: v5e
topology: v5e:2x2
jax: 0.10.0
libtpu: 0.0.40
codegen_flags: <defaults>
</compile_context>

<pallas_src>
import functools
import math

import jax
import jax.numpy as jnp
from jax.experimental import pallas as pl
from jax.experimental.pallas import tpu as pltpu


def _cdiv(a, b):
    return -(-a // b)


def _round_up(a, b):
    return _cdiv(a, b) * b


_TARGET_BLOCK_BYTES = 4 << 20   # ~4 MiB of streamed z per grid step (HBM-roofline friendly)


def _vmem_limit_bytes():
    """Generation-aware VMEM limit: ~75% of physical (96 MiB v5e/v6e, 48 MiB v7x)."""
    phys = None
    try:
        phys = getattr(pltpu.get_tpu_info(), "vmem_capacity_bytes", None)
    except Exception:
        phys = None
    if not phys:
        phys = 64 << 20          # conservative fallback (v7x per-core capacity)
    return int(min(phys * 3 // 4, 112 << 20))


def _default_n_split():
    """2 on multi-TensorCore chips (v4/v5p/v7x), else 1 (v5e/v6e are single-TC)."""
    try:
        d = jax.devices()[0]
        if d.platform != "tpu":
            return 1
        nc = getattr(d, "num_cores", None)
        if isinstance(nc, int) and nc > 1:
            return 2
        kind = str(getattr(d, "device_kind", "")).lower()
        if ("v4" in kind) or ("v5p" in kind) or ("v7" in kind):
            return 2
    except Exception:
        pass
    return 1


def _score_kernel(sel_ref, z_ref, w1_ref, b1_ref, hsum_ref, *,
                  steps, rows_per_block, total_rows):
    """Accumulate per-metapath sums of tanh(z @ W1 + b1) over node tiles.

    sel_ref : (M, R) constant one-hot selector; row m picks flat rows r with r % M == m.
    z_ref   : (R, D) tile of z viewed as (N*M, D); rows past N*M (boundary block) are
              undefined garbage and are masked below.
    hsum_ref: (M, H) resident f32 accumulator for this reduction chunk.
    """
    @pl.when(pl.program_id(1) == 0)
    def _init():
        hsum_ref[...] = jnp.zeros_like(hsum_ref)

    # Global (unclamped) flat-row offset of this step; rows >= N*M are invalid
    # (boundary-block tail or a clamped revisit) and must contribute exactly zero.
    lin = pl.program_id(0) * steps + pl.program_id(1)
    row0 = lin * rows_per_block
    row_ids = jax.lax.broadcasted_iota(jnp.int32, (rows_per_block, 1), 0) + row0
    valid = row_ids < total_rows

    h = jnp.tanh(
        jnp.dot(z_ref[...], w1_ref[...], preferred_element_type=jnp.float32)
        + b1_ref[...])                                                   # (R, H) f32
    h = jnp.where(valid, h, 0.0)
    # Metapath grouping as one MXU matmul with output width H (selector is hoisted
    # and constant across the grid; rides on MXU slack).
    hsum_ref[...] += jnp.dot(sel_ref[...], h, preferred_element_type=jnp.float32)


def _wsum_kernel(zmd_ref, g_ref, out_ref):
    """out = z_(n, m*d) @ G with G the beta-weighted block-diagonal (M*D, D) matrix."""
    out_ref[...] = jnp.dot(zmd_ref[...], g_ref[...],
                           preferred_element_type=jnp.float32).astype(out_ref.dtype)


def semantic_attention(z, w1, b1, w2, *, n_split=None):
    """Pallas implementation of SemanticAttention.forward for z of shape [N, M, D]."""
    N, M, D = z.shape
    D_w, H = w1.shape
    assert D_w == D
    itemsize = jnp.dtype(z.dtype).itemsize

    if n_split is None:
        n_split = _default_n_split()

    vmem_limit = _vmem_limit_bytes()
    budget = max(16 << 20, vmem_limit - (8 << 20))   # headroom for compiler scratch

    # VMEM layout-padded widths (last dim pads to 128 lanes, 2nd-last to 8 sublanes).
    Dp = _round_up(D, 128)
    Hp = _round_up(H, 128)
    Mp = _round_up(M, 8)

    # ---------------- Kernel 1: per-metapath hidden-state sums ----------------
    # Nodes per grid step: aim for ~4 MiB of streamed z, capped by the VMEM budget
    # (double-buffered z tile + selector + f32 tanh intermediate, lane padding included).
    per_node_k1 = M * (2 * Dp * itemsize + 2 * Mp * 4 + Hp * 4)
    fixed_k1 = (2 * _round_up(D, 8) * Hp * itemsize        # W1
                + 2 * 8 * Hp * 4                           # b1
                + 2 * Mp * Hp * 4                          # accumulator block
                + (2 << 20))
    t1 = min((budget - fixed_k1) // per_node_k1,
             max(1, _TARGET_BLOCK_BYTES // (M * D * itemsize)),
             _round_up(N, 8))
    t1 = max(8, (t1 // 8) * 8)                  # nodes per step, multiple of 8
    R = t1 * M                                  # flat (node, metapath) rows per block
    total_rows = N * M
    nblocks = _cdiv(total_rows, R)
    n_split_eff = max(1, min(n_split, nblocks))
    steps = _cdiv(nblocks, n_split_eff)
    last_block = nblocks - 1

    z2d = z.reshape(total_rows, D)              # contiguous view, no copy
    w1_z = w1.astype(z.dtype)
    b1_2d = b1.reshape(1, H).astype(jnp.float32)
    sel = (jnp.arange(R)[None, :] % M == jnp.arange(M)[:, None]).astype(jnp.float32)

    score_kernel = functools.partial(
        _score_kernel, steps=steps, rows_per_block=R, total_rows=total_rows)

    partials = pl.pallas_call(
        score_kernel,
        out_shape=jax.ShapeDtypeStruct((n_split_eff, M, H), jnp.float32),
        grid=(n_split_eff, steps),
        in_specs=[
            pl.BlockSpec((M, R), lambda c, i: (0, 0)),
            # Clamp so the DMA never starts fully past the array; the kernel's row mask
            # (built from the unclamped step index) zeroes any clamped revisit.
            pl.BlockSpec((R, D),
                         lambda c, i: (jnp.minimum(c * steps + i, last_block), 0)),
            pl.BlockSpec((D, H), lambda c, i: (0, 0)),
            pl.BlockSpec((1, H), lambda c, i: (0, 0)),
        ],
        out_specs=pl.BlockSpec((None, M, H), lambda c, i: (c, 0, 0)),
        compiler_params=pltpu.CompilerParams(
            dimension_semantics=("parallel", "arbitrary"),
            vmem_limit_bytes=vmem_limit),
    )(sel, z2d, w1_z, b1_2d)

    # Tiny finalize in plain JAX: combine split partials, mean over nodes, @w2, softmax.
    hsum = partials.sum(axis=0)                                      # (M, H) f32
    w = jnp.dot(hsum, w2.astype(jnp.float32)) / jnp.float32(N)       # (M, 1)
    beta = jax.nn.softmax(w, axis=0)                                 # (M, 1)

    # ---------------- Kernel 2: beta-weighted sum over metapaths ----------------
    # z presented as the contiguous (N, M*D) view (lane-dense input block); the
    # metapath contraction + beta weighting is one matmul against a (M*D, D)
    # beta-block-diagonal matrix. Rows are independent, so boundary-block garbage only
    # lands in output rows >= N, which Pallas drops on the masked write.
    # TODO(synk): on v5e with large D (>= ~128) this identity-style matmul can flip
    # MXU-bound; a VPU multiply-accumulate over the M lane-groups would be cheaper there.
    MD = M * D
    MDp = _round_up(MD, 128)
    per_node_k2 = 2 * MDp * itemsize + 2 * Dp * itemsize
    fixed_k2 = 2 * _round_up(MD, 8) * Dp * itemsize + (2 << 20)
    t2 = min((budget - fixed_k2) // per_node_k2,
             max(1, _TARGET_BLOCK_BYTES // (MD * itemsize)),
             _round_up(N, 8))
    t2 = max(8, (t2 // 8) * 8)

    zmd = z.reshape(N, MD)                       # contiguous view, no copy
    eye_d = jnp.eye(D, dtype=jnp.float32)
    g = (beta.reshape(M, 1, 1) * eye_d[None]).reshape(MD, D).astype(z.dtype)

    out = pl.pallas_call(
        _wsum_kernel,
        out_shape=jax.ShapeDtypeStruct((N, D), z.dtype),
        grid=(_cdiv(N, t2),),
        in_specs=[
            pl.BlockSpec((t2, MD), lambda i: (i, 0)),
            pl.BlockSpec((MD, D), lambda i: (0, 0)),
        ],
        out_specs=pl.BlockSpec((t2, D), lambda i: (i, 0)),
        compiler_params=pltpu.CompilerParams(
            dimension_semantics=("parallel",),
            vmem_limit_bytes=vmem_limit),
    )(zmd, g)

    return out


def semantic_attention_ref(z, w1, b1, w2):
    """Pure-JAX reference mirroring the PyTorch forward."""
    h = jnp.tanh(z @ w1 + b1[None, None, :])    # (N, M, H)
    s = h @ w2                                  # (N, M, 1)
    w = s.mean(axis=0)                          # (M, 1)
    beta = jax.nn.softmax(w, axis=0)            # (M, 1)
    return (beta[None, :, :] * z).sum(axis=1)   # (N, D)


if __name__ == "__main__":
    # Small shapes: N nodes (not tile-divisible, to exercise the boundary-block/masking
    # path), M metapaths, D=in_size, H=hidden_size.
    N, M, D, H = 50, 4, 32, 32
    key = jax.random.PRNGKey(0)
    kz, kw1, kb1, kw2 = jax.random.split(key, 4)

    z = jax.random.normal(kz, (N, M, D), dtype=jnp.float32)
    # Deterministic synthetic parameters (nn.Linear(D, H) and nn.Linear(H, 1, bias=False)).
    w1 = jax.random.normal(kw1, (D, H), dtype=jnp.float32) * (1.0 / math.sqrt(D))
    b1 = jax.random.normal(kb1, (H,), dtype=jnp.float32) * 0.1
    w2 = jax.random.normal(kw2, (H, 1), dtype=jnp.float32) * (1.0 / math.sqrt(H))

    out = jax.jit(semantic_attention)(z, w1, b1, w2)
    out = jax.block_until_ready(out)

    ref = semantic_attention_ref(z, w1, b1, w2)
    assert out.shape == (N, D), out.shape
    err = jnp.max(jnp.abs(out - ref))
    assert jnp.allclose(out, ref, rtol=1e-5, atol=1e-5), f"max abs err = {err}"

    print("KERNEL_OK")
</pallas_src>

<mosaic_0001>
module attributes {stable_mosaic.version = 11 : i64} {
  func.func @_score_kernel(%arg0: i32, %arg1: i32, %arg2: memref<4x224xf32, #tpu.memory_space<vmem>>, %arg3: memref<224x32xf32, #tpu.memory_space<vmem>>, %arg4: memref<32x32xf32, #tpu.memory_space<vmem>>, %arg5: memref<1x32xf32, #tpu.memory_space<vmem>>, %arg6: memref<1x4x32xf32, #tpu.memory_space<vmem>>) attributes {dimension_semantics = [#tpu.dimension_semantics<parallel>, #tpu.dimension_semantics<arbitrary>], iteration_bounds = array<i64: 1, 1>, scalar_prefetch = 0 : i64, scratch_operands = 0 : i64, tpu.core_type = #tpu.core_type<tc>, window_params = [{pipeline_mode = #tpu.pipeline_mode<synchronous>, transform_indices = @transform_0, window_bounds = array<i64: 4, 224>}, {transform_indices = @transform_1, window_bounds = array<i64: 224, 32>}, {pipeline_mode = #tpu.pipeline_mode<synchronous>, transform_indices = @transform_2, window_bounds = array<i64: 32, 32>}, {pipeline_mode = #tpu.pipeline_mode<synchronous>, transform_indices = @transform_3, window_bounds = array<i64: 1, 32>}, {transform_indices = @transform_4, window_bounds = array<i64: 1, 4, 32>}]} {
    %c0_i32 = arith.constant 0 : i32
    %0 = arith.cmpi eq, %arg1, %c0_i32 : i32
    %1 = arith.extui %0 : i1 to i32
    %c0_i32_0 = arith.constant 0 : i32
    %2 = arith.cmpi ne, %1, %c0_i32_0 : i32
    scf.if %2 {
      %cst_16 = arith.constant 0.000000e+00 : f32
      %30 = vector.broadcast %cst_16 : f32 to vector<4x32xf32>
      %c0_17 = arith.constant 0 : index
      %c0_18 = arith.constant 0 : index
      %c0_19 = arith.constant 0 : index
      %31 = vector.load %arg6[%c0_17, %c0_18, %c0_19] : memref<1x4x32xf32, #tpu.memory_space<vmem>>, vector<1x4x32xf32>
      %32 = vector.shape_cast %31 : vector<1x4x32xf32> to vector<4x32xf32>
      %33 = vector.shape_cast %30 : vector<4x32xf32> to vector<1x4x32xf32>
      tpu.vector_store %arg6[%c0_17, %c0_18, %c0_19], %33 {strides = array<i32>} : memref<1x4x32xf32, #tpu.memory_space<vmem>>, vector<1x4x32xf32>,
    } else {
    }
    %c1_i32 = arith.constant 1 : i32
    %3 = arith.muli %arg0, %c1_i32 : i32
    %4 = arith.addi %3, %arg1 : i32
    %c224_i32 = arith.constant 224 : i32
    %5 = arith.muli %4, %c224_i32 : i32
    %6 = tpu.iota {dimensions = array<i32: 0>} : vector<224x1xi32>
    %7 = vector.broadcast %5 : i32 to vector<224x1xi32>
    %8 = arith.addi %6, %7 : vector<224x1xi32>
    %c200_i32 = arith.constant 200 : i32
    %9 = vector.broadcast %c200_i32 : i32 to vector<224x1xi32>
    %10 = arith.cmpi slt, %8, %9 : vector<224x1xi32>
    %c0 = arith.constant 0 : index
    %c0_1 = arith.constant 0 : index
    %11 = vector.load %arg3[%c0, %c0_1] : memref<224x32xf32, #tpu.memory_space<vmem>>, vector<224x32xf32>
    %c0_2 = arith.constant 0 : index
    %c0_3 = arith.constant 0 : index
    %12 = vector.load %arg4[%c0_2, %c0_3] : memref<32x32xf32, #tpu.memory_space<vmem>>, vector<32x32xf32>
    %cst = arith.constant dense<0.000000e+00> : vector<224x32xf32>
    %13 = tpu.matmul %11, %12, %cst {dimension_numbers = #tpu.dot_dimension_numbers<[1], [0], [0], [1], [0, 0, 1, 1], [], []>} : vector<224x32xf32>, vector<32x32xf32>, vector<224x32xf32> -> vector<224x32xf32>
    %c0_4 = arith.constant 0 : index
    %c0_5 = arith.constant 0 : index
    %14 = vector.load %arg5[%c0_4, %c0_5] : memref<1x32xf32, #tpu.memory_space<vmem>>, vector<1x32xf32>
    %15 = vector.broadcast %14 : vector<1x32xf32> to vector<224x32xf32>
    %16 = arith.addf %13, %15 : vector<224x32xf32>
    %17 = math.tanh %16 : vector<224x32xf32>
    %cst_6 = arith.constant 0.000000e+00 : f32
    %18 = vector.shape_cast %10 : vector<224x1xi1> to vector<224x1xi1>
    %19 = vector.broadcast %18 : vector<224x1xi1> to vector<224x32xi1>
    %20 = vector.broadcast %cst_6 : f32 to vector<224x32xf32>
    %21 = arith.select %19, %17, %20 : vector<224x32xi1>, vector<224x32xf32>
    %c0_7 = arith.constant 0 : index
    %c0_8 = arith.constant 0 : index
    %c0_9 = arith.constant 0 : index
    %22 = vector.load %arg6[%c0_7, %c0_8, %c0_9] : memref<1x4x32xf32, #tpu.memory_space<vmem>>, vector<1x4x32xf32>
    %23 = vector.shape_cast %22 : vector<1x4x32xf32> to vector<4x32xf32>
    %c0_10 = arith.constant 0 : index
    %c0_11 = arith.constant 0 : index
    %24 = vector.load %arg2[%c0_10, %c0_11] : memref<4x224xf32, #tpu.memory_space<vmem>>, vector<4x224xf32>
    %cst_12 = arith.constant dense<0.000000e+00> : vector<4x32xf32>
    %25 = tpu.matmul %24, %21, %cst_12 {dimension_numbers = #tpu.dot_dimension_numbers<[1], [0], [0], [1], [0, 0, 1, 1], [], []>} : vector<4x224xf32>, vector<224x32xf32>, vector<4x32xf32> -> vector<4x32xf32>
    %26 = arith.addf %23, %25 : vector<4x32xf32>
    %c0_13 = arith.constant 0 : index
    %c0_14 = arith.constant 0 : index
    %c0_15 = arith.constant 0 : index
    %27 = vector.load %arg6[%c0_13, %c0_14, %c0_15] : memref<1x4x32xf32, #tpu.memory_space<vmem>>, vector<1x4x32xf32>
    %28 = vector.shape_cast %27 : vector<1x4x32xf32> to vector<4x32xf32>
    %29 = vector.shape_cast %26 : vector<4x32xf32> to vector<1x4x32xf32>
    tpu.vector_store %arg6[%c0_13, %c0_14, %c0_15], %29 {strides = array<i32>} : memref<1x4x32xf32, #tpu.memory_space<vmem>>, vector<1x4x32xf32>,
    return
  }
  func.func @transform_0(%arg0: i32, %arg1: i32) -> (i32, i32) {
    %c0_i32 = arith.constant 0 : i32
    %c0_i32_0 = arith.constant 0 : i32
    %c0_i32_1 = arith.constant 0 : i32
    return %c0_i32, %c0_i32_0 : i32, i32
  }
  func.func @transform_1(%arg0: i32, %arg1: i32) -> (i32, i32) {
    %c1_i32 = arith.constant 1 : i32
    %0 = arith.muli %arg0, %c1_i32 : i32
    %1 = arith.addi %0, %arg1 : i32
    %c0_i32 = arith.constant 0 : i32
    %2 = arith.minsi %1, %c0_i32 : i32
    %c0_i32_0 = arith.constant 0 : i32
    %c0_i32_1 = arith.constant 0 : i32
    return %2, %c0_i32_0 : i32, i32
  }
  func.func @transform_2(%arg0: i32, %arg1: i32) -> (i32, i32) {
    %c0_i32 = arith.constant 0 : i32
    %c0_i32_0 = arith.constant 0 : i32
    %c0_i32_1 = arith.constant 0 : i32
    return %c0_i32, %c0_i32_0 : i32, i32
  }
  func.func @transform_3(%arg0: i32, %arg1: i32) -> (i32, i32) {
    %c0_i32 = arith.constant 0 : i32
    %c0_i32_0 = arith.constant 0 : i32
    %c0_i32_1 = arith.constant 0 : i32
    return %c0_i32, %c0_i32_0 : i32, i32
  }
  func.func @transform_4(%arg0: i32, %arg1: i32) -> (i32, i32, i32) {
    %c0_i32 = arith.constant 0 : i32
    %c0_i32_0 = arith.constant 0 : i32
    %c0_i32_1 = arith.constant 0 : i32
    return %arg0, %c0_i32, %c0_i32_0 : i32, i32, i32
  }
}

module attributes {stable_mosaic.version = 11 : i64} {
  func.func @_wsum_kernel(%arg0: i32, %arg1: memref<56x128xf32, #tpu.memory_space<vmem>>, %arg2: memref<128x32xf32, #tpu.memory_space<vmem>>, %arg3: memref<56x32xf32, #tpu.memory_space<vmem>>) attributes {dimension_semantics = [#tpu.dimension_semantics<parallel>], iteration_bounds = array<i64: 1>, scalar_prefetch = 0 : i64, scratch_operands = 0 : i64, tpu.core_type = #tpu.core_type<tc>, window_params = [{transform_indices = @transform_0, window_bounds = array<i64: 56, 128>}, {pipeline_mode = #tpu.pipeline_mode<synchronous>, transform_indices = @transform_1, window_bounds = array<i64: 128, 32>}, {transform_indices = @transform_2, window_bounds = array<i64: 56, 32>}]} {
    %c0 = arith.constant 0 : index
    %c0_0 = arith.constant 0 : index
    %0 = vector.load %arg1[%c0, %c0_0] : memref<56x128xf32, #tpu.memory_space<vmem>>, vector<56x128xf32>
    %c0_1 = arith.constant 0 : index
    %c0_2 = arith.constant 0 : index
    %1 = vector.load %arg2[%c0_1, %c0_2] : memref<128x32xf32, #tpu.memory_space<vmem>>, vector<128x32xf32>
    %cst = arith.constant dense<0.000000e+00> : vector<56x32xf32>
    %2 = tpu.matmul %0, %1, %cst {dimension_numbers = #tpu.dot_dimension_numbers<[1], [0], [0], [1], [0, 0, 1, 1], [], []>} : vector<56x128xf32>, vector<128x32xf32>, vector<56x32xf32> -> vector<56x32xf32>
    %c0_3 = arith.constant 0 : index
    %c0_4 = arith.constant 0 : index
    %3 = vector.load %arg3[%c0_3, %c0_4] : memref<56x32xf32, #tpu.memory_space<vmem>>, vector<56x32xf32>
    tpu.vector_store %arg3[%c0_3, %c0_4], %2 {strides = array<i32>} : memref<56x32xf32, #tpu.memory_space<vmem>>, vector<56x32xf32>,
    return
  }
  func.func @transform_0(%arg0: i32) -> (i32, i32) {
    %c0_i32 = arith.constant 0 : i32
    %c0_i32_0 = arith.constant 0 : i32
    return %arg0, %c0_i32 : i32, i32
  }
  func.func @transform_1(%arg0: i32) -> (i32, i32) {
    %c0_i32 = arith.constant 0 : i32
    %c0_i32_0 = arith.constant 0 : i32
    %c0_i32_1 = arith.constant 0 : i32
    return %c0_i32, %c0_i32_0 : i32, i32
  }
  func.func @transform_2(%arg0: i32) -> (i32, i32) {
    %c0_i32 = arith.constant 0 : i32
    %c0_i32_0 = arith.constant 0 : i32
    return %arg0, %c0_i32 : i32, i32
  }
}

</mosaic_0001>

<bundles_post_ra>
// kernel: semantic_attention.2
= control target key start
LH: loop header
LB: loop body
LE: loop exit
PB: predicated region body
PF: predicated region fallthrough
CT: control target
= control target key end

     0   :  { %vm189_vm0 = vcmask 261120   ;;  %vm494_vm1 = vcmask 785408   ;;  %vm63_vm2 = vcmask 257024   ;;  %s856_s2 = inlined_call_operand.vmem [shape: f32[32,32], index: 2, kind: input, shape index: {}]   ;;  %s857_s1 = inlined_call_operand.vmem [shape: f32[200,32], index: 1, kind: input, shape index: {}]   ;;  %s858_s3 = inlined_call_operand.vmem [shape: f32[1,32], index: 3, kind: input, shape index: {}]   ;;  %s859_s0 = inlined_call_operand.vmem [shape: f32[4,224], index: 0, kind: input, shape index: {}]   ;;  %s860_s4 = inlined_call_operand.vmem [shape: f32[1,4,32], index: 4, kind: output, shape index: {}]  }
   0x1   :  { %v184_v0 = vld [vmem:[%s856_s2 + $0x18] sm:$0xff]  ;;  %v183_v1 = vld [vmem:[%s856_s2 + $0x10] sm:$0xff]  ;;  %v182_v2 = vld [vmem:[%s856_s2 + $0x8] sm:$0xff] }
   0x2   :  { %286 = vmatpush.msra.mxu0 %v184_v0  ;;  %579 = vmatpush.msra.mxu1 %v184_v0  ;;  %v181_v3 = vld [vmem:[%s856_s2] sm:$0xff]  ;;  %v162_v5 = vld [vmem:[%s857_s1 + $0x48] sm:$0xff]  ;;  %v172_v6 = vld [vmem:[%s857_s1 + $0x98] sm:$0xff] }
   0x3   :  { %581 = vmatpush.msra.mxu3 %v184_v0  ;;  %580 = vmatpush.msra.mxu2 %v184_v0  ;;  %v153_v4 = vld [vmem:[%s857_s1] sm:$0xff]  ;;  %v154_v8 = vld [vmem:[%s857_s1 + $0x8] sm:$0xff]  ;;  %v163_v9 = vld [vmem:[%s857_s1 + $0x50] sm:$0xff] }
   0x4   :  { %287 = vmatpush.msra.mxu0 %v183_v1  ;;  %582 = vmatpush.msra.mxu1 %v183_v1  ;;  %v169_v7 = vld [vmem:[%s857_s1 + $0x80] sm:$0xff]  ;;  %v170_v11 = vld [vmem:[%s857_s1 + $0x88] sm:$0xff]  ;;  %v155_v12 = vld [vmem:[%s857_s1 + $0x10] sm:$0xff] }
   0x5   :  { %584 = vmatpush.msra.mxu3 %v183_v1  ;;  %583 = vmatpush.msra.mxu2 %v183_v1  ;;  %v173_v10 = vld [vmem:[%s857_s1 + $0xa0] sm:$0xff]  ;;  %v164_v13 = vld [vmem:[%s857_s1 + $0x58] sm:$0xff]  ;;  %v174_v14 = vld [vmem:[%s857_s1 + $0xa8] sm:$0xff] }
   0x6   :  { %288 = vmatpush.msra.mxu0 %v182_v2  ;;  %585 = vmatpush.msra.mxu1 %v182_v2  ;;  %v171_v15 = vld [vmem:[%s857_s1 + $0x90] sm:$0xff]  ;;  %v156_v16 = vld [vmem:[%s857_s1 + $0x18] sm:$0xff]  ;;  %v165_v17 = vld [vmem:[%s857_s1 + $0x60] sm:$0xff] }
   0x7   :  { %587 = vmatpush.msra.mxu3 %v182_v2  ;;  %586 = vmatpush.msra.mxu2 %v182_v2  ;;  %v175_v18 = vld [vmem:[%s857_s1 + $0xb0] sm:$0xff]  ;;  %v157_v19 = vld [vmem:[%s857_s1 + $0x20] sm:$0xff]  ;;  %v166_v20 = vld [vmem:[%s857_s1 + $0x68] sm:$0xff] }
   0x8   :  { %289 = vmatpush.msra.mxu0 %v181_v3  ;;  %588 = vmatpush.msra.mxu1 %v181_v3  ;;  %v176_v21 = vld [vmem:[%s857_s1 + $0xb8] sm:$0xff]  ;;  %v158_v22 = vld [vmem:[%s857_s1 + $0x28] sm:$0xff]  ;;  %v167_v23 = vld [vmem:[%s857_s1 + $0x70] sm:$0xff] }
   0x9   :  { %590 = vmatpush.msra.mxu3 %v181_v3  ;;  %550 = vmatmul.msk.f32.vlgmr.msra.gmra.mxu0 %vm189_vm0, %v153_v4  ;;  %v177_v24 = vld [vmem:[%s857_s1 + $0xc0] sm:$0xff]  ;;  %v159_v25 = vld [vmem:[%s857_s1 + $0x30] sm:$0xff]  ;;  %v168_v26 = vld [vmem:[%s857_s1 + $0x78] sm:$0xff] }
   0xa   :  { %559 = vmatmul.msk.f32.vlgmr.msra.gmra.mxu1 %vm189_vm0, %v162_v5  ;;  %569 = vmatmul.msk.f32.vlgmr.msra.gmra.mxu3 %vm189_vm0, %v172_v6  ;;  %v160_v27 = vld [vmem:[%s857_s1 + $0x38] sm:$0xff]  ;;  %v161_v28 = vld [vmem:[%s857_s1 + $0x40] sm:$0xff]  ;;  %v178_v50 = vld [vmem:[%s857_s1 + $0xc8] sm:$0xff] }
   0xb   :  { %589 = vmatpush.msra.mxu2 %v181_v3  ;;  %v784_v29 = vld [vmem:[%s858_s3] ss:$0 sm:$0xff]  ;;  %v179_v62 = vld [vmem:[%s857_s1 + $0xd0] sm:$0xff] }
   0xc   :  { %566 = vmatmul.msk.f32.vlgmr.msra.gmra.mxu2 %vm189_vm0, %v169_v7  ;;  %v488_v53 = vld [vmem:[%s859_s0] sm:$0xff] }
   0xd   :  { %490 = vst [vmem:[#allocation1] ss:$2 sm:$0xff] %v488_v53 }
  0x11   :  { %551 = vmatmul.msk.f32.gmra.mxu0 %vm189_vm0, %v154_v8 }
  0x12   :  { %560 = vmatmul.msk.f32.gmra.mxu1 %vm189_vm0, %v163_v9  ;;  %570 = vmatmul.msk.f32.gmra.mxu3 %vm189_vm0, %v173_v10 }
  0x14   :  { %567 = vmatmul.msk.f32.gmra.mxu2 %vm189_vm0, %v170_v11 }
  0x19   :  { %552 = vmatmul.msk.f32.gmra.mxu0 %vm189_vm0, %v155_v12 }
  0x1a   :  { %561 = vmatmul.msk.f32.gmra.mxu1 %vm189_vm0, %v164_v13  ;;  %571 = vmatmul.msk.f32.gmra.mxu3 %vm189_vm0, %v174_v14  ;;  %v180_v13 = vld [vmem:[%s857_s1 + $0xd8] sm:$0xff] }
  0x1c   :  { %568 = vmatmul.msk.f32.gmra.mxu2 %vm189_vm0, %v171_v15 }
  0x21   :  { %553 = vmatmul.msk.f32.gmra.mxu0 %vm189_vm0, %v156_v16 }
  0x22   :  { %562 = vmatmul.msk.f32.gmra.mxu1 %vm189_vm0, %v165_v17  ;;  %572 = vmatmul.msk.f32.gmra.mxu3 %vm189_vm0, %v175_v18 }
  0x29   :  { %554 = vmatmul.msk.f32.gmra.mxu0 %vm189_vm0, %v157_v19 }
  0x2a   :  { %563 = vmatmul.msk.f32.gmra.mxu1 %vm189_vm0, %v166_v20  ;;  %573 = vmatmul.msk.f32.gmra.mxu3 %vm189_vm0, %v176_v21 }
  0x31   :  { %555 = vmatmul.msk.f32.gmra.mxu0 %vm189_vm0, %v158_v22 }
  0x32   :  { %564 = vmatmul.msk.f32.gmra.mxu1 %vm189_vm0, %v167_v23  ;;  %574 = vmatmul.msk.f32.gmra.mxu3 %vm189_vm0, %v177_v24 }
  0x39   :  { %556 = vmatmul.msk.f32.gmra.mxu0 %vm189_vm0, %v159_v25 }
  0x3a   :  { %565 = vmatmul.msk.f32.gmra.mxu1 %vm189_vm0, %v168_v26  ;;  %575 = vmatmul.msk.f32.gmra.mxu3 %vm189_vm0, %v178_v50  ;;  %v643_v50 = vmov 0.0  }
  0x3b   :  { %64 = vst.msk [vmem:[%s860_s4] sm:$0xf] %vm63_vm2, %v643_v50 }
  0x41   :  { %557 = vmatmul.msk.f32.gmra.mxu0 %vm189_vm0, %v160_v27 }
  0x42   :  { %576 = vmatmul.msk.f32.gmra.mxu3 %vm189_vm0, %v179_v62  ;;  %v487_v53 = vld [vmem:[%s860_s4] sm:$0xf] }
  0x49   :  { %558 = vmatmul.msk.f32.gmra.mxu0 %vm189_vm0, %v161_v28 }
  0x4a   :  { %577 = vmatmul.msk.f32.gmra.mxu3 %vm189_vm0, %v180_v13 }
  0x86   :  { %v291_v30 = vpop.f32.mrf.mxu0 }
  0x87   :  { %v787_v31 = vadd.f32 %v784_v29, %v291_v30  ;;  %v789_v32 = vpop.f32.mrf.mxu1 }
  0x88   :  { %v319_v16 = vadd.f32 %v784_v29, %v789_v32 }
  0x8d   :  { %v348_v33 = vpop.f32.mrf.mxu3 }
  0x8e   :  { %v294_v34 = vpop.f32.mrf.mxu0  ;;  %v349_v54 = vadd.f32 %v784_v29, %v348_v33 }
  0x8f   :  { %v792_v35 = vadd.f32 %v784_v29, %v294_v34  ;;  %v321_v36 = vpop.f32.mrf.mxu1  ;;  %v339_v46 = vpop.f32.mrf.mxu2 }
  0x90   :  { %v322_v10 = vadd.f32 %v784_v29, %v321_v36  ;;  %v340_v19 = vadd.f32 %v784_v29, %v339_v46  ;;  %v492_v36 = vld.sshfl [vmem:[#allocation1 + $0x8] sm:$0xff pattern:$0x75316420] }
  0x95   :  { %v351_v37 = vpop.f32.mrf.mxu3 }
  0x96   :  { %v794_v38 = vpop.f32.mrf.mxu0  ;;  %v352_v1 = vadd.f32 %v784_v29, %v351_v37 }
  0x97   :  { %v324_v39 = vpop.f32.mrf.mxu1  ;;  %v342_v51 = vpop.f32.mrf.mxu2 }
  0x98   :  { %v325_v5 = vadd.f32 %v784_v29, %v324_v39  ;;  %v343_v12 = vadd.f32 %v784_v29, %v342_v51 }
  0x9d   :  { %v354_v40 = vpop.f32.mrf.mxu3 }
  0x9e   :  { %v796_v41 = vpop.f32.mrf.mxu0  ;;  %v355_v63 = vadd.f32 %v784_v29, %v354_v40 }
  0x9f   :  { %v327_v42 = vpop.f32.mrf.mxu1  ;;  %v345_v2 = vpop.f32.mrf.mxu2  ;;  %v301_v40 = vadd.f32 %v784_v29, %v796_v41 }
  0xa0   :  { %v328_v3 = vadd.f32 %v784_v29, %v327_v42  ;;  %v346_v8 = vadd.f32 %v784_v29, %v345_v2 }
  0xa5   :  { %v357_v43 = vpop.f32.mrf.mxu3 }
  0xa6   :  { %v798_v44 = vpop.f32.mrf.mxu0  ;;  %v358_v58 = vadd.f32 %v784_v29, %v357_v43  ;;  %v298_v43 = vadd.f32 %v784_v29, %v794_v38 }
  0xa7   :  { %v330_v45 = vpop.f32.mrf.mxu1  ;;  %v304_v34 = vadd.f32 %v784_v29, %v798_v44 }
  0xa8   :  { %v331_v0 = vadd.f32 %v784_v29, %v330_v45 }
  0xad   :  { %v360_v47 = vpop.f32.mrf.mxu3 }
  0xae   :  { %v800_v48 = vpop.f32.mrf.mxu0  ;;  %v361_v52 = vadd.f32 %v784_v29, %v360_v47 }
  0xaf   :  { %v333_v49 = vpop.f32.mrf.mxu1  ;;  %v307_v32 = vadd.f32 %v784_v29, %v800_v48 }
  0xb0   :  { %593 = vtanh.f32 %v361_v52  ;;  %v334_v60 = vadd.f32 %v784_v29, %v333_v49 }
  0xb5   :  { %v363_v55 = vpop.f32.mrf.mxu3 }
  0xb6   :  { %v364_v56 = vadd.f32 %v784_v29, %v363_v55  ;;  %v309_v57 = vpop.f32.mrf.mxu0  ;;  %v594_v4 = vpop.eup %593 }
  0xb7   :  { %v336_v59 = vpop.f32.mrf.mxu1  ;;  %v310_v28 = vadd.f32 %v784_v29, %v309_v57 }
  0xb8   :  { %595 = vtanh.f32 %v364_v56  ;;  %v337_v61 = vadd.f32 %v784_v29, %v336_v59 }
  0xb9   :  { %597 = vtanh.f32 %v349_v54 }
  0xba   :  { %599 = vtanh.f32 %v337_v61 }
  0xbb   :  { %601 = vtanh.f32 %v358_v58 }
  0xbc   :  { %603 = vtanh.f32 %v334_v60 }
  0xbd   :  { %605 = vtanh.f32 %v355_v63  ;;  %v366_v49 = vpop.f32.mrf.mxu3 }
  0xbe   :  { %v596_v6 = vpop.eup %595  ;;  %607 = vtanh.f32 %v331_v0  ;;  %v312_v7 = vpop.f32.mrf.mxu0 }
  0xbf   :  { %v598_v9 = vpop.eup %597  ;;  %609 = vtanh.f32 %v352_v1  ;;  %524 = vmatpush.msrb.mxu2 %v596_v6  ;;  %v313_v24 = vadd.f32 %v784_v29, %v312_v7 }
  0xc0   :  { %v600_v11 = vpop.eup %599  ;;  %611 = vtanh.f32 %v328_v3 }
  0xc1   :  { %v602_v14 = vpop.eup %601  ;;  %613 = vtanh.f32 %v325_v5  ;;  %497 = vmatpush.msrb.mxu1 %v600_v11  ;;  %525 = vmatpush.msrb.mxu2 %v594_v4 }
  0xc2   :  { %v604_v15 = vpop.eup %603  ;;  %615 = vtanh.f32 %v346_v8 }
  0xc3   :  { %v606_v17 = vpop.eup %605  ;;  %617 = vtanh.f32 %v322_v10  ;;  %498 = vmatpush.msrb.mxu1 %v604_v15  ;;  %526 = vmatpush.msrb.mxu2 %v602_v14 }
  0xc4   :  { %v608_v18 = vpop.eup %607  ;;  %619 = vtanh.f32 %v343_v12 }
  0xc5   :  { %v610_v20 = vpop.eup %609  ;;  %499 = vmatpush.msrb.mxu1 %v608_v18  ;;  %527 = vmatpush.msrb.mxu2 %v606_v17  ;;  %621 = vtanh.f32 %v319_v16 }
  0xc6   :  { %v612_v21 = vpop.eup %611  ;;  %v315_v22 = vpop.f32.mrf.mxu0  ;;  %623 = vtanh.f32 %v340_v19 }
  0xc7   :  { %v614_v23 = vpop.eup %613  ;;  %v316_v25 = vadd.f32 %v784_v29, %v315_v22  ;;  %500 = vmatpush.msrb.mxu1 %v612_v21  ;;  %528 = vmatpush.msrb.mxu2 %v610_v20  ;;  %v491_v29 = vld.sshfl [vmem:[#allocation1] sm:$0xff pattern:$0x75316420] }
  0xc8   :  { %v616_v26 = vpop.eup %615 }
  0xc9   :  { %v618_v27 = vpop.eup %617  ;;  %625 = vtanh.f32 %v316_v25  ;;  %501 = vmatpush.msrb.mxu1 %v614_v23  ;;  %529 = vmatpush.msrb.mxu2 %v598_v9 }
  0xca   :  { %v620_v30 = vpop.eup %619  ;;  %627 = vtanh.f32 %v313_v24 }
  0xcb   :  { %502 = vmatpush.msrb.mxu1 %v618_v27  ;;  %530 = vmatpush.msrb.mxu2 %v616_v26  ;;  %v622_v33 = vpop.eup %621  ;;  %629 = vtanh.f32 %v310_v28 }
  0xcc   :  { %v624_v37 = vpop.eup %623  ;;  %631 = vtanh.f32 %v307_v32 }
  0xcd   :  { %503 = vmatpush.msrb.mxu1 %v622_v33  ;;  %531 = vmatpush.msrb.mxu2 %v620_v30  ;;  %633 = vtanh.f32 %v304_v34 }
  0xce   :  { %635 = vtanh.f32 %v301_v40 }
  0xcf   :  { %v626_v39 = vpop.eup %625  ;;  %532 = vmatpush.msrb.mxu2 %v624_v37  ;;  %637 = vtanh.f32 %v298_v43 }
  0xd0   :  { %504 = vmatpush.msrb.mxu1 %v626_v39  ;;  %578 = vmatmul.msk.f32.vlgmr.msrb.gmra.mxu2 %vm494_vm1, %v492_v36  ;;  %v628_v42 = vpop.eup %627  ;;  %639 = vtanh.f32 %v792_v35  ;;  %v369_v35 = vpop.f32.mrf.mxu3 }
  0xd1   :  { %v630_v44 = vpop.eup %629  ;;  %641 = vtanh.f32 %v787_v31 }
  0xd2   :  { %505 = vmatpush.msrb.mxu1 %v628_v42  ;;  %v632_v45 = vpop.eup %631 }
  0xd3   :  { %v634_v46 = vpop.eup %633 }
  0xd4   :  { %506 = vmatpush.msrb.mxu1 %v630_v44  ;;  %v636_v41 = vpop.eup %635 }
  0xd5   :  { %v638_v47 = vpop.eup %637 }
  0xd6   :  { %507 = vmatpush.msrb.mxu1 %v632_v45  ;;  %v640_v48 = vpop.eup %639 }
  0xd7   :  { %v642_v38 = vpop.eup %641 }
  0xd8   :  { %508 = vmatpush.msrb.mxu1 %v634_v46  ;;  %v372_v51 = vpop.f32.mrf.mxu3 }
  0xda   :  { %509 = vmatpush.msrb.mxu1 %v636_v41 }
  0xdc   :  { %510 = vmatpush.msrb.mxu1 %v638_v47 }
  0xde   :  { %511 = vmatpush.msrb.mxu1 %v640_v48 }
  0xe0   :  { %512 = vmatpush.msrb.mxu1 %v642_v38 }
  0xe1   :  { %513 = vmatmul.f32.vlgmr.msrb.gmra.mxu1 %v491_v29 }
 0x153   :  { %v534_v52 = vpop.f32.mrf.mxu2 }
 0x15e   :  { %v514_v31 = vpop.f32.mrf.mxu1 }
 0x15f   :  { %v535_v54 = vadd.f32 %v534_v52, %v514_v31 }
 0x161   :  { %v537_v55 = vadd.f32 %v535_v54, %v487_v53 }
 0x163   :  { %539 = vst.msk [vmem:[%s860_s4] sm:$0xf] %vm63_vm2, %v537_v55 }

// kernel: semantic_attention.3
= control target key start
LH: loop header
LB: loop body
LE: loop exit
PB: predicated region body
PF: predicated region fallthrough
CT: control target
= control target key end

     0   :  { %vm72_vm0 = vcmask 261120   ;;  %s237_s1 = inlined_call_operand.vmem [shape: f32[128,32], index: 1, kind: input, shape index: {}]   ;;  %s238_s0 = inlined_call_operand.vmem [shape: f32[50,128], index: 0, kind: input, shape index: {}]   ;;  %s239_s2 = inlined_call_operand.vmem [shape: f32[50,32], index: 2, kind: output, shape index: {}]  }
   0x1   :  { %v33_v0 = vld [vmem:[%s237_s1 + $0x78] sm:$0xff]  ;;  %v32_v1 = vld [vmem:[%s237_s1 + $0x70] sm:$0xff]  ;;  %v31_v2 = vld [vmem:[%s237_s1 + $0x68] sm:$0xff] }
   0x2   :  { %85 = vmatpush.msra.mxu2 %v33_v0  ;;  %86 = vmatpush.msra.mxu3 %v33_v0  ;;  %v30_v3 = vld [vmem:[%s237_s1 + $0x60] sm:$0xff]  ;;  %v29_v4 = vld [vmem:[%s237_s1 + $0x58] sm:$0xff]  ;;  %v28_v5 = vld [vmem:[%s237_s1 + $0x50] sm:$0xff] }
   0x3   :  { %34 = vmatpush.msra.mxu0 %v33_v0  ;;  %84 = vmatpush.msra.mxu1 %v33_v0  ;;  %v27_v6 = vld [vmem:[%s237_s1 + $0x48] sm:$0xff]  ;;  %v26_v7 = vld [vmem:[%s237_s1 + $0x40] sm:$0xff]  ;;  %v25_v8 = vld [vmem:[%s237_s1 + $0x38] sm:$0xff] }
   0x4   :  { %88 = vmatpush.msra.mxu2 %v32_v1  ;;  %89 = vmatpush.msra.mxu3 %v32_v1  ;;  %v24_v9 = vld [vmem:[%s237_s1 + $0x30] sm:$0xff]  ;;  %v23_v10 = vld [vmem:[%s237_s1 + $0x28] sm:$0xff]  ;;  %v22_v11 = vld [vmem:[%s237_s1 + $0x20] sm:$0xff] }
   0x5   :  { %35 = vmatpush.msra.mxu0 %v32_v1  ;;  %87 = vmatpush.msra.mxu1 %v32_v1  ;;  %v21_v12 = vld [vmem:[%s237_s1 + $0x18] sm:$0xff]  ;;  %v20_v13 = vld [vmem:[%s237_s1 + $0x10] sm:$0xff]  ;;  %v19_v14 = vld [vmem:[%s237_s1 + $0x8] sm:$0xff] }
   0x6   :  { %91 = vmatpush.msra.mxu2 %v31_v2  ;;  %92 = vmatpush.msra.mxu3 %v31_v2  ;;  %v18_v15 = vld [vmem:[%s237_s1] sm:$0xff]  ;;  %v14_v16 = vld [vmem:[%s238_s0 + $0x18] sm:$0xff]  ;;  %v16_v17 = vld [vmem:[%s238_s0 + $0x28] sm:$0xff] }
   0x7   :  { %36 = vmatpush.msra.mxu0 %v31_v2  ;;  %90 = vmatpush.msra.mxu1 %v31_v2  ;;  %v11_v18 = vld [vmem:[%s238_s0] sm:$0xff]  ;;  %v13_v19 = vld [vmem:[%s238_s0 + $0x10] sm:$0xff]  ;;  %v12_v22 = vld [vmem:[%s238_s0 + $0x8] sm:$0xff] }
   0x8   :  { %94 = vmatpush.msra.mxu2 %v30_v3  ;;  %95 = vmatpush.msra.mxu3 %v30_v3  ;;  %v15_v20 = vld [vmem:[%s238_s0 + $0x20] sm:$0xff]  ;;  %v17_v21 = vld [vmem:[%s238_s0 + $0x30] sm:$0xff] }
   0x9   :  { %37 = vmatpush.msra.mxu0 %v30_v3  ;;  %93 = vmatpush.msra.mxu1 %v30_v3 }
   0xa   :  { %97 = vmatpush.msra.mxu2 %v29_v4  ;;  %98 = vmatpush.msra.mxu3 %v29_v4 }
   0xb   :  { %38 = vmatpush.msra.mxu0 %v29_v4  ;;  %96 = vmatpush.msra.mxu1 %v29_v4 }
   0xc   :  { %100 = vmatpush.msra.mxu2 %v28_v5  ;;  %101 = vmatpush.msra.mxu3 %v28_v5 }
   0xd   :  { %39 = vmatpush.msra.mxu0 %v28_v5  ;;  %99 = vmatpush.msra.mxu1 %v28_v5 }
   0xe   :  { %103 = vmatpush.msra.mxu2 %v27_v6  ;;  %104 = vmatpush.msra.mxu3 %v27_v6 }
   0xf   :  { %40 = vmatpush.msra.mxu0 %v27_v6  ;;  %102 = vmatpush.msra.mxu1 %v27_v6 }
  0x10   :  { %106 = vmatpush.msra.mxu2 %v26_v7  ;;  %107 = vmatpush.msra.mxu3 %v26_v7 }
  0x11   :  { %41 = vmatpush.msra.mxu0 %v26_v7  ;;  %105 = vmatpush.msra.mxu1 %v26_v7 }
  0x12   :  { %109 = vmatpush.msra.mxu2 %v25_v8  ;;  %110 = vmatpush.msra.mxu3 %v25_v8 }
  0x13   :  { %42 = vmatpush.msra.mxu0 %v25_v8  ;;  %108 = vmatpush.msra.mxu1 %v25_v8 }
  0x14   :  { %112 = vmatpush.msra.mxu2 %v24_v9  ;;  %113 = vmatpush.msra.mxu3 %v24_v9 }
  0x15   :  { %43 = vmatpush.msra.mxu0 %v24_v9  ;;  %111 = vmatpush.msra.mxu1 %v24_v9 }
  0x16   :  { %115 = vmatpush.msra.mxu2 %v23_v10  ;;  %116 = vmatpush.msra.mxu3 %v23_v10 }
  0x17   :  { %44 = vmatpush.msra.mxu0 %v23_v10  ;;  %114 = vmatpush.msra.mxu1 %v23_v10 }
  0x18   :  { %118 = vmatpush.msra.mxu2 %v22_v11  ;;  %119 = vmatpush.msra.mxu3 %v22_v11 }
  0x19   :  { %45 = vmatpush.msra.mxu0 %v22_v11  ;;  %117 = vmatpush.msra.mxu1 %v22_v11 }
  0x1a   :  { %121 = vmatpush.msra.mxu2 %v21_v12  ;;  %122 = vmatpush.msra.mxu3 %v21_v12 }
  0x1b   :  { %46 = vmatpush.msra.mxu0 %v21_v12  ;;  %120 = vmatpush.msra.mxu1 %v21_v12 }
  0x1c   :  { %124 = vmatpush.msra.mxu2 %v20_v13  ;;  %125 = vmatpush.msra.mxu3 %v20_v13 }
  0x1d   :  { %47 = vmatpush.msra.mxu0 %v20_v13  ;;  %123 = vmatpush.msra.mxu1 %v20_v13 }
  0x1e   :  { %127 = vmatpush.msra.mxu2 %v19_v14  ;;  %128 = vmatpush.msra.mxu3 %v19_v14 }
  0x1f   :  { %48 = vmatpush.msra.mxu0 %v19_v14  ;;  %126 = vmatpush.msra.mxu1 %v19_v14 }
  0x20   :  { %130 = vmatpush.msra.mxu2 %v18_v15  ;;  %131 = vmatpush.msra.mxu3 %v18_v15 }
  0x21   :  { %59 = vmatmul.f32.vlgmr.msra.gmra.mxu2 %v14_v16  ;;  %65 = vmatmul.f32.vlgmr.msra.gmra.mxu3 %v16_v17 }
  0x22   :  { %49 = vmatpush.msra.mxu0 %v18_v15  ;;  %129 = vmatpush.msra.mxu1 %v18_v15 }
  0x23   :  { %50 = vmatmul.f32.vlgmr.msra.gmra.mxu0 %v11_v18  ;;  %56 = vmatmul.f32.vlgmr.msra.gmra.mxu1 %v13_v19 }
  0x29   :  { %62 = vmatmul.f32.gmra.mxu2 %v15_v20  ;;  %68 = vmatmul.f32.gmra.mxu3 %v17_v21 }
  0x2b   :  { %53 = vmatmul.f32.gmra.mxu0 %v12_v22 }
  0xa0   :  { %v51_v23 = vpop.f32.mrf.mxu0  ;;  %v57_v24 = vpop.f32.mrf.mxu1 }
  0xa1   :  { %73 = vst.msk [vmem:[%s239_s2] sm:$0xff] %vm72_vm0, %v51_v23 }
  0xa2   :  { %75 = vst.msk [vmem:[%s239_s2 + $0x10] sm:$0xff] %vm72_vm0, %v57_v24 }
  0xa4   :  { %v60_v25 = vpop.f32.mrf.mxu2  ;;  %v66_v26 = vpop.f32.mrf.mxu3 }
  0xa5   :  { %76 = vst.msk [vmem:[%s239_s2 + $0x18] sm:$0xff] %vm72_vm0, %v60_v25 }
  0xa6   :  { %78 = vst.msk [vmem:[%s239_s2 + $0x28] sm:$0xff] %vm72_vm0, %v66_v26 }
  0xa8   :  { %v54_v27 = vpop.f32.mrf.mxu0 }
  0xa9   :  { %74 = vst.msk [vmem:[%s239_s2 + $0x8] sm:$0xff] %vm72_vm0, %v54_v27 }
  0xac   :  { %v63_v28 = vpop.f32.mrf.mxu2  ;;  %v69_v29 = vpop.f32.mrf.mxu3 }
  0xad   :  { %77 = vst.msk [vmem:[%s239_s2 + $0x20] sm:$0xff] %vm72_vm0, %v63_v28 }
  0xae   :  { %79 = vst.msk [vmem:[%s239_s2 + $0x30] sm:$0xff] %vm72_vm0, %v69_v29 }

</bundles_post_ra>
